<compile_context>
chip_gen: v6e
topology: v6e:2x2x1
jax: 0.10.0
libtpu: 0.0.40
codegen_flags: <defaults>
</compile_context>

<pallas_src>
import numpy as np
import jax
import jax.numpy as jnp
from jax.experimental import pallas as pl
from jax.experimental.pallas import tpu as pltpu

_SCALES = (1, 2, 3, 6)
_EPS = 1e-5


# ---------------------------------------------------------------------------
# Kernel: one HW tile (all batches, all scales) per grid step.
# ---------------------------------------------------------------------------
def _pyramid_pooling_kernel(x_ref, poolT_ref, w_ref, bias_ref, upT_ref, o_ref):
    # x_ref:     (N*C, HW)        f32, batch folded onto sublanes (grid-invariant)
    # poolT_ref: (HW, KK)         bf16, 4 adaptive-avg-pool operators, concatenated
    # w_ref:     (N*4Cq, N*C)     bf16, batch-block-diagonal 1x1 conv, BN folded
    # bias_ref:  (N*4Cq, KK)      f32, folded BN bias on same-scale bins, -1e30
    #                             elsewhere (ReLU then kills cross-scale terms)
    # upT_ref:   (KK, hw_tile)    bf16, bilinear(align_corners) upsample operators,
    #                             tiled along HW (the only HW-tiled input)
    # o_ref:     (N, C+4Cq, hw_tile) f32
    N, _, hw_tile = o_ref.shape
    NC = x_ref.shape[0]
    C = NC // N
    Cq4 = w_ref.shape[0] // N

    start = pl.multiple_of(pl.program_id(0) * hw_tile, hw_tile)

    x = x_ref[...]                                       # (N*C, HW) f32
    x_tile = x_ref[:, pl.ds(start, hw_tile)]             # (N*C, hw_tile) f32

    # Adaptive average pooling, all scales & batches at once (bf16 MXU, f32 acc).
    pooled = jnp.dot(x.astype(jnp.bfloat16), poolT_ref[...],
                     preferred_element_type=jnp.float32)             # (N*C, KK)

    # 1x1 conv + folded BN; the -1e30 bias entries implement the per-scale mask.
    y = jnp.dot(w_ref[...], pooled.astype(jnp.bfloat16),
                preferred_element_type=jnp.float32)                  # (N*4Cq, KK)
    y = jnp.maximum(y + bias_ref[...], 0.0)

    # Bilinear (align_corners=True) upsample onto the current HW tile.
    feat = jnp.dot(y.astype(jnp.bfloat16), upT_ref[...],
                   preferred_element_type=jnp.float32)               # (N*4Cq, hw_tile)

    # Channel concat per batch element (N is a trace-time constant; C and 4*Cq
    # are multiples of 8, so these are sublane-aligned stores).
    for n in range(N):
        o_ref[n, :C, :] = x_tile[n * C:(n + 1) * C, :]       # identity branch (exact f32)
        o_ref[n, C:, :] = feat[n * Cq4:(n + 1) * Cq4, :]     # pyramid branches


# ---------------------------------------------------------------------------
# Linear operators (precomputed in the wrapper).
# ---------------------------------------------------------------------------
def _adaptive_pool_matrix(out_size, in_size):
    # A[i, j] = weight of input j in output bin i (PyTorch AdaptiveAvgPool).
    A = np.zeros((out_size, in_size), np.float32)
    for i in range(out_size):
        start = (i * in_size) // out_size
        end = -((-(i + 1) * in_size) // out_size)                     # ceil
        A[i, start:end] = 1.0 / float(end - start)
    return A


def _upsample_matrix(out_size, in_size):
    # 1-D bilinear interpolation matrix, align_corners=True.
    U = np.zeros((out_size, in_size), np.float32)
    if in_size == 1:
        U[:, 0] = 1.0
        return U
    for p in range(out_size):
        pos = p * (in_size - 1) / (out_size - 1) if out_size > 1 else 0.0
        q0 = min(int(np.floor(pos)), in_size - 2)
        t = pos - q0
        U[p, q0] += 1.0 - t
        U[p, q0 + 1] += t
    return U


def _num_hw_tiles(HW):
    # Split the lane (HW) axis across TensorCores on multi-core chips (v7x /
    # megacore); keep a single grid step on single-TC chips (v5e / v6e) so the
    # whole module is one pipeline step with zero per-step overhead.
    if HW % 256 != 0:
        return 1
    try:
        kind = jax.devices()[0].device_kind.lower()
    except Exception:
        return 1
    single_tc = ("lite" in kind) or ("v5e" in kind) or ("v6" in kind)
    return 1 if single_tc else 2


# ---------------------------------------------------------------------------
# Wrapper: build operators, fold BN, call the kernel.
# ---------------------------------------------------------------------------
def pyramid_pooling(x, conv_weights, bn_gammas, bn_betas, bn_means, bn_vars,
                    eps=_EPS):
    """x: (N, C, H, W) f32.  conv_weights: 4 x (C//4, C, 1, 1).  bn_*: 4 x (C//4,).
    Returns (N, 2*C, H, W)."""
    N, C, H, W = x.shape
    assert C % 8 == 0, "C must be a multiple of 8 (sublane-aligned channel split)"
    Cq = C // 4
    HW = H * W
    kk = [k * k for k in _SCALES]
    KK = sum(kk)

    hw_tiles = _num_hw_tiles(HW)
    hw_tile = HW // hw_tiles

    # Pooling / upsample operators (separable -> kron of 1-D operators), bf16 MXU side.
    poolT_blocks, upT_blocks = [], []
    for k in _SCALES:
        A2d = np.kron(_adaptive_pool_matrix(k, H), _adaptive_pool_matrix(k, W))
        U2d = np.kron(_upsample_matrix(H, k), _upsample_matrix(W, k))
        poolT_blocks.append(A2d.T)                                    # (HW, k*k)
        upT_blocks.append(U2d.T)                                      # (k*k, HW)
    poolT = jnp.asarray(np.concatenate(poolT_blocks, axis=1), dtype=jnp.bfloat16)  # (HW, KK)
    upT = jnp.asarray(np.concatenate(upT_blocks, axis=0), dtype=jnp.bfloat16)      # (KK, HW)

    # Fold BN (inference) into the bias-free 1x1 conv of each scale; fuse the
    # per-scale block mask into the bias (-1e30 off-block entries + ReLU).
    w_rows, bias_rows = [], []
    off = 0
    for s in range(4):
        scale = bn_gammas[s] / jnp.sqrt(bn_vars[s] + eps)             # (Cq,)
        w_rows.append(conv_weights[s][:, :, 0, 0] * scale[:, None])
        b = bn_betas[s] - bn_means[s] * scale                         # (Cq,)
        row_mask = np.zeros((KK,), np.float32)
        row_mask[off:off + kk[s]] = 1.0
        bias_rows.append(b[:, None] * row_mask[None, :]
                         + (-1e30) * (1.0 - row_mask)[None, :])
        off += kk[s]
    w_stack = jnp.concatenate(w_rows, axis=0).astype(jnp.float32)          # (4Cq, C)
    bias_blk = jnp.concatenate(bias_rows, axis=0).astype(jnp.float32)      # (4Cq, KK)

    # Batch-block-diagonal weight (weights are shared across batch) and tiled bias.
    w_bd = jnp.kron(jnp.eye(N, dtype=jnp.float32), w_stack).astype(jnp.bfloat16)  # (N*4Cq, N*C)
    bias = jnp.tile(bias_blk, (N, 1))                                             # (N*4Cq, KK)

    # Batch folded onto the sublane axis; kept f32 so the identity branch is exact
    # (the kernel casts to bf16 only for the MXU matmuls).
    x_fold = x.reshape(N * C, HW).astype(jnp.float32)

    out_shape = jax.ShapeDtypeStruct((N, C + 4 * Cq, HW), jnp.float32)

    def build(single_buffer_invariants):
        inv_kw = (dict(pipeline_mode=pl.Buffered(1))
                  if single_buffer_invariants else {})
        grid_spec = pltpu.PrefetchScalarGridSpec(
            num_scalar_prefetch=0,
            grid=(hw_tiles,),
            in_specs=[
                pl.BlockSpec((N * C, HW), lambda j: (0, 0), **inv_kw),
                pl.BlockSpec((HW, KK), lambda j: (0, 0), **inv_kw),
                pl.BlockSpec((N * 4 * Cq, N * C), lambda j: (0, 0), **inv_kw),
                pl.BlockSpec((N * 4 * Cq, KK), lambda j: (0, 0), **inv_kw),
                pl.BlockSpec((KK, hw_tile), lambda j: (0, j)),
            ],
            out_specs=pl.BlockSpec((N, C + 4 * Cq, hw_tile),
                                   lambda j: (0, 0, j)),
        )
        return pl.pallas_call(
            _pyramid_pooling_kernel,
            out_shape=out_shape,
            grid_spec=grid_spec,
            compiler_params=pltpu.CompilerParams(
                dimension_semantics=("parallel",)),
        )

    try:
        # Preferred: grid-invariant operands single-buffered (saves VMEM, no
        # pointless double-buffer bookkeeping).
        out_flat = build(True)(x_fold, poolT, w_bd, bias, upT)
    except Exception:
        # Fallback if pipeline_mode=pl.Buffered(1) is not supported by this
        # JAX/Mosaic version on top-level pallas_call BlockSpecs.
        out_flat = build(False)(x_fold, poolT, w_bd, bias, upT)

    return out_flat.reshape(N, C + 4 * Cq, H, W)


# ---------------------------------------------------------------------------
# Pure-JAX reference (independent code path: slice-mean pooling + gather lerp)
# ---------------------------------------------------------------------------
def _adaptive_avg_pool2d_ref(x, k):
    _, _, H, W = x.shape
    rows = []
    for i in range(k):
        r0 = (i * H) // k
        r1 = -((-(i + 1) * H) // k)
        cols = []
        for j in range(k):
            c0 = (j * W) // k
            c1 = -((-(j + 1) * W) // k)
            cols.append(jnp.mean(x[:, :, r0:r1, c0:c1], axis=(2, 3)))
        rows.append(jnp.stack(cols, axis=-1))
    return jnp.stack(rows, axis=-2)                                   # (N, C, k, k)


def _upsample_bilinear_ref(y, out_h, out_w):
    # align_corners=True
    _, _, kh, kw = y.shape

    def idx_w(out_size, in_size):
        if in_size == 1:
            z = jnp.zeros((out_size,), jnp.int32)
            return z, z, jnp.zeros((out_size,), jnp.float32)
        pos = jnp.arange(out_size, dtype=jnp.float32) * (in_size - 1) / (out_size - 1)
        lo = jnp.clip(jnp.floor(pos).astype(jnp.int32), 0, in_size - 2)
        return lo, lo + 1, pos - lo.astype(jnp.float32)

    r0, r1, tr = idx_w(out_h, kh)
    c0, c1, tc = idx_w(out_w, kw)
    yr = (y[:, :, r0, :] * (1.0 - tr)[None, None, :, None]
          + y[:, :, r1, :] * tr[None, None, :, None])
    return (yr[:, :, :, c0] * (1.0 - tc)[None, None, None, :]
            + yr[:, :, :, c1] * tc[None, None, None, :])


def _reference(x, conv_weights, gammas, betas, means, vars_, eps=_EPS):
    _, _, H, W = x.shape
    feats = [x]
    for s, k in enumerate(_SCALES):
        p = _adaptive_avg_pool2d_ref(x, k)
        y = jnp.einsum('oc,nckl->nokl', conv_weights[s][:, :, 0, 0], p)
        y = (y - means[s][None, :, None, None]) / jnp.sqrt(
            vars_[s] + eps)[None, :, None, None]
        y = y * gammas[s][None, :, None, None] + betas[s][None, :, None, None]
        y = jnp.maximum(y, 0.0)
        feats.append(_upsample_bilinear_ref(y, H, W))
    return jnp.concatenate(feats, axis=1)


if __name__ == "__main__":
    # PyramidPooling(in_channels=16) on a (2, 16, 16, 16) input
    N, C, H, W = 2, 16, 16, 16
    Cq = C // 4
    key = jax.random.PRNGKey(0)
    keys = jax.random.split(key, 1 + 5 * 4)

    x = jax.random.normal(keys[0], (N, C, H, W), jnp.float32)
    conv_weights, gammas, betas, means, vars_ = [], [], [], [], []
    for s in range(4):
        kw_, kg, kb, km, kv = keys[1 + 5 * s: 1 + 5 * (s + 1)]
        conv_weights.append(
            0.3 * jax.random.normal(kw_, (Cq, C, 1, 1), jnp.float32))
        gammas.append(1.0 + 0.1 * jax.random.normal(kg, (Cq,), jnp.float32))
        betas.append(0.1 * jax.random.normal(kb, (Cq,), jnp.float32))
        means.append(0.05 * jax.random.normal(km, (Cq,), jnp.float32))
        vars_.append(jnp.abs(0.5 + 0.1 * jax.random.normal(kv, (Cq,), jnp.float32)))

    out = pyramid_pooling(x, conv_weights, gammas, betas, means, vars_)
    out = jax.block_until_ready(out)

    ref = _reference(x, conv_weights, gammas, betas, means, vars_)
    assert out.shape == (N, 2 * C, H, W)
    # bf16 MXU inputs with f32 accumulation -> relaxed tolerance vs f32 reference
    # (identity branch is exact f32).
    assert jnp.allclose(out, ref, rtol=2e-2, atol=2e-2), "mismatch vs reference"
    print("KERNEL_OK")
</pallas_src>

<mosaic_0001>
module attributes {stable_mosaic.version = 11 : i64} {
  func.func @_pyramid_pooling_kernel(%arg0: i32, %arg1: memref<32x256xf32, #tpu.memory_space<vmem>>, %arg2: memref<256x50xbf16, #tpu.memory_space<vmem>>, %arg3: memref<32x32xbf16, #tpu.memory_space<vmem>>, %arg4: memref<32x50xf32, #tpu.memory_space<vmem>>, %arg5: memref<50x128xbf16, #tpu.memory_space<vmem>>, %arg6: memref<2x32x128xf32, #tpu.memory_space<vmem>>) attributes {dimension_semantics = [#tpu.dimension_semantics<parallel>], iteration_bounds = array<i64: 2>, scalar_prefetch = 0 : i64, scratch_operands = 0 : i64, tpu.core_type = #tpu.core_type<tc>, window_params = [{pipeline_mode = #tpu.pipeline_mode<synchronous>, transform_indices = @transform_0, window_bounds = array<i64: 32, 256>}, {pipeline_mode = #tpu.pipeline_mode<synchronous>, transform_indices = @transform_1, window_bounds = array<i64: 256, 50>}, {pipeline_mode = #tpu.pipeline_mode<synchronous>, transform_indices = @transform_2, window_bounds = array<i64: 32, 32>}, {pipeline_mode = #tpu.pipeline_mode<synchronous>, transform_indices = @transform_3, window_bounds = array<i64: 32, 50>}, {transform_indices = @transform_4, window_bounds = array<i64: 50, 128>}, {transform_indices = @transform_5, window_bounds = array<i64: 2, 32, 128>}]} {
    %c128_i32 = arith.constant 128 : i32
    %0 = arith.muli %arg0, %c128_i32 : i32
    %1 = tpu.assume_multiple %0, 128 : i32
    %c0 = arith.constant 0 : index
    %c0_0 = arith.constant 0 : index
    %2 = vector.load %arg1[%c0, %c0_0] : memref<32x256xf32, #tpu.memory_space<vmem>>, vector<32x256xf32>
    %c0_1 = arith.constant 0 : index
    %3 = arith.index_cast %1 : i32 to index
    %4 = vector.load %arg1[%c0_1, %3] : memref<32x256xf32, #tpu.memory_space<vmem>>, vector<32x128xf32>
    %5 = arith.truncf %2 : vector<32x256xf32> to vector<32x256xbf16>
    %c0_2 = arith.constant 0 : index
    %c0_3 = arith.constant 0 : index
    %6 = vector.load %arg2[%c0_2, %c0_3] : memref<256x50xbf16, #tpu.memory_space<vmem>>, vector<256x50xbf16>
    %cst = arith.constant dense<0.000000e+00> : vector<32x50xf32>
    %7 = tpu.matmul %5, %6, %cst {dimension_numbers = #tpu.dot_dimension_numbers<[1], [0], [0], [1], [0, 0, 1, 1], [], []>} : vector<32x256xbf16>, vector<256x50xbf16>, vector<32x50xf32> -> vector<32x50xf32>
    %c0_4 = arith.constant 0 : index
    %c0_5 = arith.constant 0 : index
    %8 = vector.load %arg3[%c0_4, %c0_5] : memref<32x32xbf16, #tpu.memory_space<vmem>>, vector<32x32xbf16>
    %9 = arith.truncf %7 : vector<32x50xf32> to vector<32x50xbf16>
    %cst_6 = arith.constant dense<0.000000e+00> : vector<32x50xf32>
    %10 = tpu.matmul %8, %9, %cst_6 {dimension_numbers = #tpu.dot_dimension_numbers<[1], [0], [0], [1], [0, 0, 1, 1], [], []>} : vector<32x32xbf16>, vector<32x50xbf16>, vector<32x50xf32> -> vector<32x50xf32>
    %c0_7 = arith.constant 0 : index
    %c0_8 = arith.constant 0 : index
    %11 = vector.load %arg4[%c0_7, %c0_8] : memref<32x50xf32, #tpu.memory_space<vmem>>, vector<32x50xf32>
    %12 = arith.addf %10, %11 : vector<32x50xf32>
    %cst_9 = arith.constant 0.000000e+00 : f32
    %13 = vector.broadcast %cst_9 : f32 to vector<32x50xf32>
    %14 = arith.maximumf %12, %13 : vector<32x50xf32>
    %15 = arith.truncf %14 : vector<32x50xf32> to vector<32x50xbf16>
    %c0_10 = arith.constant 0 : index
    %c0_11 = arith.constant 0 : index
    %16 = vector.load %arg5[%c0_10, %c0_11] : memref<50x128xbf16, #tpu.memory_space<vmem>>, vector<50x128xbf16>
    %cst_12 = arith.constant dense<0.000000e+00> : vector<32x128xf32>
    %17 = tpu.matmul %15, %16, %cst_12 {dimension_numbers = #tpu.dot_dimension_numbers<[1], [0], [0], [1], [0, 0, 1, 1], [], []>} : vector<32x50xbf16>, vector<50x128xbf16>, vector<32x128xf32> -> vector<32x128xf32>
    %18 = vector.extract_strided_slice %4 {offsets = [0, 0], sizes = [16, 128], strides = [1, 1]} : vector<32x128xf32> to vector<16x128xf32>
    %c0_13 = arith.constant 0 : index
    %c0_14 = arith.constant 0 : index
    %c0_15 = arith.constant 0 : index
    %19 = vector.load %arg6[%c0_13, %c0_14, %c0_15] : memref<2x32x128xf32, #tpu.memory_space<vmem>>, vector<1x16x128xf32>
    %20 = vector.shape_cast %19 : vector<1x16x128xf32> to vector<16x128xf32>
    %21 = vector.shape_cast %18 : vector<16x128xf32> to vector<1x16x128xf32>
    tpu.vector_store %arg6[%c0_13, %c0_14, %c0_15], %21 {strides = array<i32>} : memref<2x32x128xf32, #tpu.memory_space<vmem>>, vector<1x16x128xf32>,
    %22 = vector.extract_strided_slice %17 {offsets = [0, 0], sizes = [16, 128], strides = [1, 1]} : vector<32x128xf32> to vector<16x128xf32>
    %c0_16 = arith.constant 0 : index
    %c16 = arith.constant 16 : index
    %c0_17 = arith.constant 0 : index
    %23 = vector.load %arg6[%c0_16, %c16, %c0_17] : memref<2x32x128xf32, #tpu.memory_space<vmem>>, vector<1x16x128xf32>
    %24 = vector.shape_cast %23 : vector<1x16x128xf32> to vector<16x128xf32>
    %25 = vector.shape_cast %22 : vector<16x128xf32> to vector<1x16x128xf32>
    tpu.vector_store %arg6[%c0_16, %c16, %c0_17], %25 {strides = array<i32>} : memref<2x32x128xf32, #tpu.memory_space<vmem>>, vector<1x16x128xf32>,
    %26 = vector.extract_strided_slice %4 {offsets = [16, 0], sizes = [16, 128], strides = [1, 1]} : vector<32x128xf32> to vector<16x128xf32>
    %c1 = arith.constant 1 : index
    %c0_18 = arith.constant 0 : index
    %c0_19 = arith.constant 0 : index
    %27 = vector.load %arg6[%c1, %c0_18, %c0_19] : memref<2x32x128xf32, #tpu.memory_space<vmem>>, vector<1x16x128xf32>
    %28 = vector.shape_cast %27 : vector<1x16x128xf32> to vector<16x128xf32>
    %29 = vector.shape_cast %26 : vector<16x128xf32> to vector<1x16x128xf32>
    tpu.vector_store %arg6[%c1, %c0_18, %c0_19], %29 {strides = array<i32>} : memref<2x32x128xf32, #tpu.memory_space<vmem>>, vector<1x16x128xf32>,
    %30 = vector.extract_strided_slice %17 {offsets = [16, 0], sizes = [16, 128], strides = [1, 1]} : vector<32x128xf32> to vector<16x128xf32>
    %c1_20 = arith.constant 1 : index
    %c16_21 = arith.constant 16 : index
    %c0_22 = arith.constant 0 : index
    %31 = vector.load %arg6[%c1_20, %c16_21, %c0_22] : memref<2x32x128xf32, #tpu.memory_space<vmem>>, vector<1x16x128xf32>
    %32 = vector.shape_cast %31 : vector<1x16x128xf32> to vector<16x128xf32>
    %33 = vector.shape_cast %30 : vector<16x128xf32> to vector<1x16x128xf32>
    tpu.vector_store %arg6[%c1_20, %c16_21, %c0_22], %33 {strides = array<i32>} : memref<2x32x128xf32, #tpu.memory_space<vmem>>, vector<1x16x128xf32>,
    return
  }
  func.func @transform_0(%arg0: i32) -> (i32, i32) {
    %c0_i32 = arith.constant 0 : i32
    %c0_i32_0 = arith.constant 0 : i32
    %c0_i32_1 = arith.constant 0 : i32
    return %c0_i32, %c0_i32_0 : i32, i32
  }
  func.func @transform_1(%arg0: i32) -> (i32, i32) {
    %c0_i32 = arith.constant 0 : i32
    %c0_i32_0 = arith.constant 0 : i32
    %c0_i32_1 = arith.constant 0 : i32
    return %c0_i32, %c0_i32_0 : i32, i32
  }
  func.func @transform_2(%arg0: i32) -> (i32, i32) {
    %c0_i32 = arith.constant 0 : i32
    %c0_i32_0 = arith.constant 0 : i32
    %c0_i32_1 = arith.constant 0 : i32
    return %c0_i32, %c0_i32_0 : i32, i32
  }
  func.func @transform_3(%arg0: i32) -> (i32, i32) {
    %c0_i32 = arith.constant 0 : i32
    %c0_i32_0 = arith.constant 0 : i32
    %c0_i32_1 = arith.constant 0 : i32
    return %c0_i32, %c0_i32_0 : i32, i32
  }
  func.func @transform_4(%arg0: i32) -> (i32, i32) {
    %c0_i32 = arith.constant 0 : i32
    %c0_i32_0 = arith.constant 0 : i32
    return %c0_i32, %arg0 : i32, i32
  }
  func.func @transform_5(%arg0: i32) -> (i32, i32, i32) {
    %c0_i32 = arith.constant 0 : i32
    %c0_i32_0 = arith.constant 0 : i32
    %c0_i32_1 = arith.constant 0 : i32
    return %c0_i32, %c0_i32_0, %arg0 : i32, i32, i32
  }
}

module attributes {stable_mosaic.version = 11 : i64} {
  func.func @_pyramid_pooling_kernel(%arg0: i32, %arg1: memref<32x256xf32, #tpu.memory_space<vmem>>, %arg2: memref<256x50xbf16, #tpu.memory_space<vmem>>, %arg3: memref<32x32xbf16, #tpu.memory_space<vmem>>, %arg4: memref<32x50xf32, #tpu.memory_space<vmem>>, %arg5: memref<50x128xbf16, #tpu.memory_space<vmem>>, %arg6: memref<2x32x128xf32, #tpu.memory_space<vmem>>) attributes {dimension_semantics = [#tpu.dimension_semantics<parallel>], iteration_bounds = array<i64: 2>, scalar_prefetch = 0 : i64, scratch_operands = 0 : i64, tpu.core_type = #tpu.core_type<tc>, window_params = [{pipeline_mode = #tpu.pipeline_mode<synchronous>, transform_indices = @transform_0, window_bounds = array<i64: 32, 256>}, {pipeline_mode = #tpu.pipeline_mode<synchronous>, transform_indices = @transform_1, window_bounds = array<i64: 256, 50>}, {pipeline_mode = #tpu.pipeline_mode<synchronous>, transform_indices = @transform_2, window_bounds = array<i64: 32, 32>}, {pipeline_mode = #tpu.pipeline_mode<synchronous>, transform_indices = @transform_3, window_bounds = array<i64: 32, 50>}, {transform_indices = @transform_4, window_bounds = array<i64: 50, 128>}, {transform_indices = @transform_5, window_bounds = array<i64: 2, 32, 128>}]} {
    %c128_i32 = arith.constant 128 : i32
    %0 = arith.muli %arg0, %c128_i32 : i32
    %1 = tpu.assume_multiple %0, 128 : i32
    %c0 = arith.constant 0 : index
    %c0_0 = arith.constant 0 : index
    %2 = vector.load %arg1[%c0, %c0_0] : memref<32x256xf32, #tpu.memory_space<vmem>>, vector<32x256xf32>
    %c0_1 = arith.constant 0 : index
    %3 = arith.index_cast %1 : i32 to index
    %4 = vector.load %arg1[%c0_1, %3] : memref<32x256xf32, #tpu.memory_space<vmem>>, vector<32x128xf32>
    %5 = arith.truncf %2 : vector<32x256xf32> to vector<32x256xbf16>
    %c0_2 = arith.constant 0 : index
    %c0_3 = arith.constant 0 : index
    %6 = vector.load %arg2[%c0_2, %c0_3] : memref<256x50xbf16, #tpu.memory_space<vmem>>, vector<256x50xbf16>
    %cst = arith.constant dense<0.000000e+00> : vector<32x50xf32>
    %7 = tpu.matmul %5, %6, %cst {dimension_numbers = #tpu.dot_dimension_numbers<[1], [0], [0], [1], [0, 0, 1, 1], [], []>} : vector<32x256xbf16>, vector<256x50xbf16>, vector<32x50xf32> -> vector<32x50xf32>
    %c0_4 = arith.constant 0 : index
    %c0_5 = arith.constant 0 : index
    %8 = vector.load %arg3[%c0_4, %c0_5] : memref<32x32xbf16, #tpu.memory_space<vmem>>, vector<32x32xbf16>
    %9 = arith.truncf %7 : vector<32x50xf32> to vector<32x50xbf16>
    %cst_6 = arith.constant dense<0.000000e+00> : vector<32x50xf32>
    %10 = tpu.matmul %8, %9, %cst_6 {dimension_numbers = #tpu.dot_dimension_numbers<[1], [0], [0], [1], [0, 0, 1, 1], [], []>} : vector<32x32xbf16>, vector<32x50xbf16>, vector<32x50xf32> -> vector<32x50xf32>
    %c0_7 = arith.constant 0 : index
    %c0_8 = arith.constant 0 : index
    %11 = vector.load %arg4[%c0_7, %c0_8] : memref<32x50xf32, #tpu.memory_space<vmem>>, vector<32x50xf32>
    %12 = arith.addf %10, %11 : vector<32x50xf32>
    %cst_9 = arith.constant 0.000000e+00 : f32
    %13 = vector.broadcast %cst_9 : f32 to vector<32x50xf32>
    %14 = arith.maximumf %12, %13 : vector<32x50xf32>
    %15 = arith.truncf %14 : vector<32x50xf32> to vector<32x50xbf16>
    %c0_10 = arith.constant 0 : index
    %c0_11 = arith.constant 0 : index
    %16 = vector.load %arg5[%c0_10, %c0_11] : memref<50x128xbf16, #tpu.memory_space<vmem>>, vector<50x128xbf16>
    %cst_12 = arith.constant dense<0.000000e+00> : vector<32x128xf32>
    %17 = tpu.matmul %15, %16, %cst_12 {dimension_numbers = #tpu.dot_dimension_numbers<[1], [0], [0], [1], [0, 0, 1, 1], [], []>} : vector<32x50xbf16>, vector<50x128xbf16>, vector<32x128xf32> -> vector<32x128xf32>
    %18 = vector.extract_strided_slice %4 {offsets = [0, 0], sizes = [16, 128], strides = [1, 1]} : vector<32x128xf32> to vector<16x128xf32>
    %c0_13 = arith.constant 0 : index
    %c0_14 = arith.constant 0 : index
    %c0_15 = arith.constant 0 : index
    %19 = vector.load %arg6[%c0_13, %c0_14, %c0_15] : memref<2x32x128xf32, #tpu.memory_space<vmem>>, vector<1x16x128xf32>
    %20 = vector.shape_cast %19 : vector<1x16x128xf32> to vector<16x128xf32>
    %21 = vector.shape_cast %18 : vector<16x128xf32> to vector<1x16x128xf32>
    tpu.vector_store %arg6[%c0_13, %c0_14, %c0_15], %21 {strides = array<i32>} : memref<2x32x128xf32, #tpu.memory_space<vmem>>, vector<1x16x128xf32>,
    %22 = vector.extract_strided_slice %17 {offsets = [0, 0], sizes = [16, 128], strides = [1, 1]} : vector<32x128xf32> to vector<16x128xf32>
    %c0_16 = arith.constant 0 : index
    %c16 = arith.constant 16 : index
    %c0_17 = arith.constant 0 : index
    %23 = vector.load %arg6[%c0_16, %c16, %c0_17] : memref<2x32x128xf32, #tpu.memory_space<vmem>>, vector<1x16x128xf32>
    %24 = vector.shape_cast %23 : vector<1x16x128xf32> to vector<16x128xf32>
    %25 = vector.shape_cast %22 : vector<16x128xf32> to vector<1x16x128xf32>
    tpu.vector_store %arg6[%c0_16, %c16, %c0_17], %25 {strides = array<i32>} : memref<2x32x128xf32, #tpu.memory_space<vmem>>, vector<1x16x128xf32>,
    %26 = vector.extract_strided_slice %4 {offsets = [16, 0], sizes = [16, 128], strides = [1, 1]} : vector<32x128xf32> to vector<16x128xf32>
    %c1 = arith.constant 1 : index
    %c0_18 = arith.constant 0 : index
    %c0_19 = arith.constant 0 : index
    %27 = vector.load %arg6[%c1, %c0_18, %c0_19] : memref<2x32x128xf32, #tpu.memory_space<vmem>>, vector<1x16x128xf32>
    %28 = vector.shape_cast %27 : vector<1x16x128xf32> to vector<16x128xf32>
    %29 = vector.shape_cast %26 : vector<16x128xf32> to vector<1x16x128xf32>
    tpu.vector_store %arg6[%c1, %c0_18, %c0_19], %29 {strides = array<i32>} : memref<2x32x128xf32, #tpu.memory_space<vmem>>, vector<1x16x128xf32>,
    %30 = vector.extract_strided_slice %17 {offsets = [16, 0], sizes = [16, 128], strides = [1, 1]} : vector<32x128xf32> to vector<16x128xf32>
    %c1_20 = arith.constant 1 : index
    %c16_21 = arith.constant 16 : index
    %c0_22 = arith.constant 0 : index
    %31 = vector.load %arg6[%c1_20, %c16_21, %c0_22] : memref<2x32x128xf32, #tpu.memory_space<vmem>>, vector<1x16x128xf32>
    %32 = vector.shape_cast %31 : vector<1x16x128xf32> to vector<16x128xf32>
    %33 = vector.shape_cast %30 : vector<16x128xf32> to vector<1x16x128xf32>
    tpu.vector_store %arg6[%c1_20, %c16_21, %c0_22], %33 {strides = array<i32>} : memref<2x32x128xf32, #tpu.memory_space<vmem>>, vector<1x16x128xf32>,
    return
  }
  func.func @transform_0(%arg0: i32) -> (i32, i32) {
    %c0_i32 = arith.constant 0 : i32
    %c0_i32_0 = arith.constant 0 : i32
    %c0_i32_1 = arith.constant 0 : i32
    return %c0_i32, %c0_i32_0 : i32, i32
  }
  func.func @transform_1(%arg0: i32) -> (i32, i32) {
    %c0_i32 = arith.constant 0 : i32
    %c0_i32_0 = arith.constant 0 : i32
    %c0_i32_1 = arith.constant 0 : i32
    return %c0_i32, %c0_i32_0 : i32, i32
  }
  func.func @transform_2(%arg0: i32) -> (i32, i32) {
    %c0_i32 = arith.constant 0 : i32
    %c0_i32_0 = arith.constant 0 : i32
    %c0_i32_1 = arith.constant 0 : i32
    return %c0_i32, %c0_i32_0 : i32, i32
  }
  func.func @transform_3(%arg0: i32) -> (i32, i32) {
    %c0_i32 = arith.constant 0 : i32
    %c0_i32_0 = arith.constant 0 : i32
    %c0_i32_1 = arith.constant 0 : i32
    return %c0_i32, %c0_i32_0 : i32, i32
  }
  func.func @transform_4(%arg0: i32) -> (i32, i32) {
    %c0_i32 = arith.constant 0 : i32
    %c0_i32_0 = arith.constant 0 : i32
    return %c0_i32, %arg0 : i32, i32
  }
  func.func @transform_5(%arg0: i32) -> (i32, i32, i32) {
    %c0_i32 = arith.constant 0 : i32
    %c0_i32_0 = arith.constant 0 : i32
    %c0_i32_1 = arith.constant 0 : i32
    return %c0_i32, %c0_i32_0, %arg0 : i32, i32, i32
  }
}

</mosaic_0001>

<bundles_post_ra>
// kernel: tpu_custom_call.1
= control target key start
LH: loop header
LB: loop body
LE: loop exit
PB: predicated region body
PF: predicated region fallthrough
CT: control target
= control target key end

     0   :  { %10 = vsyncpa [#allocation4], 0  ;;  %s1241_s0 = inlined_call_operand.vmem [shape: f32[32,256], index: 0, kind: input, shape index: {}]   ;;  %s1242_s1 = inlined_call_operand.vmem [shape: bf16[256,50], index: 1, kind: input, shape index: {}]   ;;  %s1243_s2 = inlined_call_operand.vmem [shape: bf16[32,32], index: 2, kind: input, shape index: {}]   ;;  %s1244_s3 = inlined_call_operand.vmem [shape: f32[32,50], index: 3, kind: input, shape index: {}]   ;;  %s1245_s4 = inlined_call_operand.vmem [shape: bf16[50,256], index: 4, kind: input, shape index: {}]   ;;  %s1246_s5 = inlined_call_operand.hbm [shape: f32[2,32,256], index: 5, kind: output, shape index: {}]  }
   0x1   :  { %12 = vsyncpa [#allocation4 + $0x1], 0  ;;  %s1014_s18 = smov 0   ;;  %s1016_s19 = smov 0  }
   0x2   :  { %s1018_s20 = smov 0   ;;  %s1020_s21 = smov 0  }
   0x3 LB: > { %s750_s22 = sadd.s32 4294967295, %s978_s21   ;;  %s751_s23 = sadd.s32 4294967294, %s978_s21   ;;  %s978_s21 = sphi %s1020_s21, %s1252_s21   ;;  %s974_s20 = sphi %s1018_s20, %s1251_s20   ;;  %s970_s19 = sphi %s1016_s19, %s1250_s19   ;;  %s966_s18 = sphi %s1014_s18, %s1249_s18  }
   0x4   : > { %s1037_s24 = sadd.s32 1, %s978_s21   ;;  %s109_s25 = sadd.s32 1, %s974_s20 }
   0x5   : > { %s106_s26 = ssub.s32 %s978_s21, %s1037_s24  ;;  %p116_p0 = scmp.ne.s32.totalorder %s974_s20, %s970_s19 }
   0x6   : > { %p107_p1 = scmp.eq.s32.totalorder %s106_s26, 0  ;;  %p117_p2 = scmp.eq.s32.totalorder %s978_s21, 0 }
   0x7   : > { %p146_p3 = scmp.eq.s32.totalorder %s750_s22, 1  ;;  %p151_p4 = scmp.ne.s32.totalorder %s970_s19, %s966_s18 }
   0x8   : > { %s1050_s27 = scalar_select %p107_p1, %s974_s20, %s109_s25  }
   0x9   : > { %p118_p5 = por %p117_p2, %p116_p0  ;;  %p1052_p6 = por %p146_p3, %p116_p0 }
   0xa   : > { %p152_p7 = scmp.eq.s32.totalorder %s751_s23, 1  ;;  %p753_p9 = scmp.ge.s32.totalorder %s978_s21, 2 }
   0xc   : > { %p1056_p8 = por %p152_p7, %p151_p4  ;;  %180 = sbr.rel (%p753_p9) target bundleno = 26 (0x1a), region = 32 }
  0x11   : > { %183 = sbr.rel (!%p118_p5) target bundleno = 26 (0x1a), region = 36  ;;  %s185_s30 = sand.u32 (%p118_p5), 1, %s974_s20  }
  0x12   : > { %s754_s6 = sshll.u32 (%p118_p5), %s978_s21, 2  ;;  %s852_s7 = smul.u32 (%p118_p5), 28, %s185_s30 }
  0x13   : > { %s189_s10 = scalar_lea.vmem (%p118_p5), %s1245_s4, %s754_s6 }
  0x14   : > { %v206_v0 = vld [vmem:[%s189_s10] sm:$0xf] (%p118_p5)  ;;  %v208_v1 = vld [vmem:[%s189_s10 + $0x8] sm:$0xf] (%p118_p5)  ;;  %v210_v2 = vld [vmem:[%s189_s10 + $0x10] sm:$0xf] (%p118_p5) }
  0x15   : > { %v212_v3 = vld [vmem:[%s189_s10 + $0x18] sm:$0xf] (%p118_p5)  ;;  %v214_v4 = vld [vmem:[%s189_s10 + $0x20] sm:$0xf] (%p118_p5)  ;;  %s187_s11 = scalar_lea.vmem (%p118_p5), [#allocation2], %s852_s7 }
  0x16   : > { %207 = vst [vmem:[%s187_s11] sm:$0xf] %v206_v0  ;;  %209 = vst [vmem:[%s187_s11 + $0x4] sm:$0xf] %v208_v1  ;;  %v216_v5 = vld [vmem:[%s189_s10 + $0x28] sm:$0xf] }
  0x17   : > { %211 = vst [vmem:[%s187_s11 + $0x8] sm:$0xf] %v210_v2  ;;  %213 = vst [vmem:[%s187_s11 + $0xc] sm:$0xf] %v212_v3  ;;  %v218_v6 = vld [vmem:[%s189_s10 + $0x30] sm:$0xf] }
  0x18   : > { %215 = vst [vmem:[%s187_s11 + $0x10] sm:$0xf] %v214_v4  ;;  %217 = vst [vmem:[%s187_s11 + $0x14] sm:$0xf] %v216_v5 }
  0x19   : > { %219 = vst [vmem:[%s187_s11 + $0x18] sm:$0xf] %v218_v6 }
  0x1a PF: > { %p755_p10 = scmp.ge.s32.totalorder %s978_s21, 1  ;;  %p256_p11 = scmp.lt.s32.totalorder %s978_s21, 3 }
  0x1c   : > { %p257_p12 = pnand %p755_p10, %p256_p11 }
  0x1d   : > { %s1147_s14 = sand.u32 (!%p257_p12), 1, %s970_s19   ;;  %s1162_s25 = sshll.u32 (!%p257_p12), %s750_s22, 7 }
  0x1e   : > { %260 = sbr.rel (%p257_p12) target bundleno = 707 (0x2c3), region = 77  ;;  %s756_s26 = sshll.u32 (!%p257_p12), %s1147_s14, 6 }
  0x1f   : > { %s853_s15 = smul.u32 (!%p257_p12), 28, %s1147_s14  ;;  %s300_s30 = sshra.s32 (!%p257_p12), %s1162_s25, 7 }
  0x20   : > { %s758_s6 = sshll.u32 (!%p257_p12), %s300_s30, 3  ;;  %s1169_s10 = scalar_lea.vmem (!%p257_p12), [#allocation3], %s756_s26 }
  0x21   : > { %s1150_s16 = scalar_lea.vmem (!%p257_p12), [#allocation2], %s853_s15  ;;  %s303_s9 = scalar_lea.vmem (!%p257_p12), %s1241_s0, %s758_s6 }
  0x22   : > { %s681_s26 = sshll.u32 (!%p257_p12), %s1169_s10, 4  ;;  %s1196_s7 = scalar_lea.hbm (!%p257_p12), %s1246_s5, %s1162_s25  ;;  %s1189_s26 = int_to_ptr.vmem [resolvable:$true] %s681_s26 }
  0x23   : > { %v896_v7 = vld [vmem:[%s1242_s1 + $0x78] sm:$0xff]   ;;  %v898_v9 = vld [vmem:[%s1242_s1 + $0x70] sm:$0xff]   ;;  %v900_v11 = vld [vmem:[%s1242_s1 + $0x68] sm:$0xff]   ;;  %vm509_vm0 = vcmask 261120   ;;  %vm606_vm1 = vcmask 1040384   ;;  %vm599_vm2 = vcmask 408576  }
  0x24   : > { %v897_v8 = vld [vmem:[%s1242_s1 + $0x38] sm:$0xff]   ;;  %793 = vmatprep.subr.bf16.mxu0 %v896_v7  ;;  %v899_v10 = vld [vmem:[%s1242_s1 + $0x30] sm:$0xff]   ;;  %v901_v12 = vld [vmem:[%s1242_s1 + $0x28] sm:$0xff]   ;;  %s669_s8 = scalar_lea.sflag [#allocation4], %s1147_s14  ;;  %s980_s22 = smov [#allocation3]  }
  0x25   : > { %794 = vmatpush3.bf16.msra.mxu0 %v897_v8  ;;  %v902_v13 = vld [vmem:[%s1242_s1 + $0x60] sm:$0xff]   ;;  %v904_v15 = vld [vmem:[%s1242_s1 + $0x58] sm:$0xff]   ;;  %v906_v17 = vld [vmem:[%s1242_s1 + $0x50] sm:$0xff]   ;;  %s922_s11 = sshll.u32 %s980_s22, 4  ;;  %s923_s11 = int_to_ptr.vmem [resolvable:$false] %s922_s11 }
  0x26   : > { %795 = vmatprep.subr.bf16.mxu0 %v898_v9  ;;  %v903_v14 = vld [vmem:[%s1242_s1 + $0x20] sm:$0xff]   ;;  %v905_v16 = vld [vmem:[%s1242_s1 + $0x18] sm:$0xff]   ;;  %v293_v18 = vld [vmem:[%s1241_s0 + $0x8] sm:$0xff]  ;;  %s924_s12 = scalar_lea.vmem %s923_s11, 2048  ;;  %p925_p2 = scmp.lt.s32.totalorder %s1189_s26, %s923_s11 }
  0x27   : > { %v295_v19 = vld [vmem:[%s1241_s0 + $0x18] sm:$0xff]  ;;  %v907_v21 = vld [vmem:[%s1242_s1 + $0x10] sm:$0xff]   ;;  %v908_v22 = vld [vmem:[%s1242_s1 + $0x48] sm:$0xff]  }
  0x28   : > { %v309_v20 = vpack.c.bf16 %v295_v19, %v293_v18  ;;  %v909_v23 = vld [vmem:[%s1242_s1 + $0x8] sm:$0xff]   ;;  %v910_v24 = vld [vmem:[%s1242_s1 + $0x40] sm:$0xff]   ;;  %v294_v27 = vld [vmem:[%s1241_s0 + $0x10] sm:$0xff] }
  0x29   : > { %796 = vmatpush3.bf16.msra.mxu0 %v899_v10  ;;  %v911_v25 = vld [vmem:[%s1242_s1] sm:$0xff]   ;;  %v297_v28 = vld [vmem:[%s1241_s0 + $0x28] sm:$0xff]  ;;  %v299_v29 = vld [vmem:[%s1241_s0 + $0x38] sm:$0xff] }
  0x2a   : > { %797 = vmatprep.subr.bf16.mxu0 %v900_v11  ;;  %472 = vmatprep.mubr.bf16.mxu0 %v309_v20  ;;  %v292_v26 = vld [vmem:[%s1241_s0] sm:$0xff]  ;;  %v311_v31 = vpack.c.bf16 %v299_v29, %v297_v28  ;;  %v298_v33 = vld [vmem:[%s1241_s0 + $0x30] sm:$0xff]  ;;  %v913_v51 = vld [vmem:[%s1243_s2 + $0x8] sm:$0xff]  }
  0x2b   : > { %v308_v30 = vpack.c.bf16 %v294_v27, %v292_v26  ;;  %v296_v32 = vld [vmem:[%s1241_s0 + $0x20] sm:$0xff]  ;;  %v914_v50 = vld [vmem:[%s1150_s16 + $0x18] ss:$0 sps:$4 sm:$0x11]   ;;  %v915_v53 = vld [vmem:[%s1150_s16 + $0x10] sm:$0xff]  }
  0x2c   : > { %v310_v34 = vpack.c.bf16 %v298_v33, %v296_v32  ;;  %v912_v35 = vld [vmem:[%s1243_s2] sm:$0xff]   ;;  %v608_v52 = vsel %vm606_vm1, %v914_v50, 0  ;;  %v305_v57 = vld [vmem:[%s303_s9 + $0x10] sm:$0xff]  ;;  %v498_v63 = vld [vmem:[%s1244_s3 + $0x18] sm:$0xff] }
  0x2d   : > { %798 = vmatpush3.bf16.msra.mxu0 %v901_v12  ;;  %835 = vmatprep.mubr.msk.bf16.mxu1 %vm509_vm0, %v912_v35  ;;  %v916_v54 = vld [vmem:[%s1150_s16 + $0x8] sm:$0xff]   ;;  %v917_v55 = vld [vmem:[%s1150_s16] sm:$0xff]   ;;  %v307_v59 = vld [vmem:[%s303_s9 + $0x30] sm:$0xff]  ;;  %660 = vst [vmem:[%s1169_s10 + $0x8] sm:$0xff] %v305_v57 }
  0x2e   : > { %799 = vmatprep.subr.bf16.mxu0 %v902_v13  ;;  %v304_v56 = vld [vmem:[%s303_s9] sm:$0xff]  ;;  %786 = vst [vmem:[%s1169_s10 + $0x28] sm:$0xff] %v307_v59  ;;  %v497_v0 = vld [vmem:[%s1244_s3 + $0x10] sm:$0xff]  ;;  %v496_v2 = vld [vmem:[%s1244_s3 + $0x8] sm:$0xff] }
  0x2f   : > { %v306_v58 = vld [vmem:[%s303_s9 + $0x20] sm:$0xff]  ;;  %659 = vst [vmem:[%s1169_s10] sm:$0xff] %v304_v56  ;;  %s918_s9 = scalar_lea.vmem %s1189_s26, 1024 }
  0x30   : > { %785 = vst [vmem:[%s1169_s10 + $0x20] sm:$0xff] %v306_v58  ;;  %v495_v62 = vld [vmem:[%s1244_s3] sm:$0xff]  ;;  %p919_p13 = scmp.ne.s32.totalorder %s1189_s26, %s918_s9  ;;  %p926_p3 = scmp.lt.s32.totalorder %s924_s12, %s918_s9 }
  0x31   : > { %800 = vmatpush3.bf16.msra.mxu0 %v903_v14 }
  0x32   : > { %801 = vmatprep.subr.bf16.mxu0 %v904_v15  ;;  %p920_p0 = pnand %p919_p13, %p1052_p6  ;;  %p927_p4 = por %p926_p3, %p925_p2 }
  0x34   : > { %p921_p1 = pneg %p920_p0 }
  0x35   : > { %802 = vmatpush3.bf16.msra.mxu0 %v905_v16 }
  0x36   : > { %803 = vmatprep.subr.bf16.mxu0 %v906_v17  ;;  %p928_p5 = pnand %p927_p4, %p921_p1 }
  0x39   : > { %804 = vmatpush3.bf16.msra.mxu0 %v907_v21 }
  0x3a   : > { %805 = vmatprep.subr.bf16.mxu0 %v908_v22 }
  0x3d   : > { %806 = vmatpush3.bf16.msra.mxu0 %v909_v23 }
  0x3e   : > { %807 = vmatprep.subr.bf16.mxu0 %v910_v24 }
  0x41   : > { %808 = vmatpush3.bf16.msra.mxu0 %v911_v25 }
  0x44   : > { %473 = vmatmul.mubr.bf16.vlgmr.msra.gmra.mxu0 %v308_v30 }
  0x45   : > { %480 = vmatprep.mubr.bf16.mxu0 %v311_v31 }
  0x4c   : > { %481 = vmatmul.mubr.bf16.gmra.mxu0 %v310_v34 }
 0x104   : > { %v809_v36 = vpop.f32.mrf.mxu0 }
 0x106   : > { %v810_v37 = vpop.f32.mrf.mxu0 }
 0x107   : > { %v811_v47 = vadd.f32 %v810_v37, %v809_v36 }
 0x108   : > { %v812_v38 = vpop.f32.mrf.mxu0 }
 0x10a   : > { %v813_v39 = vpop.f32.mrf.mxu0 }
 0x10b   : > { %v814_v44 = vadd.f32 %v813_v39, %v812_v38 }
 0x10c   : > { %v815_v40 = vpop.f32.mrf.mxu0 }
 0x10d   : > { %v493_v49 = vpack.c.bf16 %v814_v44, %v811_v47 }
 0x10e   : > { %v816_v41 = vpop.f32.mrf.mxu0 }
 0x10f   : > { %v817_v45 = vadd.f32 %v816_v41, %v815_v40 }
 0x110   : > { %v818_v42 = vpop.f32.mrf.mxu0 }
 0x112   : > { %v819_v43 = vpop.f32.mrf.mxu0 }
 0x113   : > { %v820_v46 = vadd.f32 %v819_v43, %v818_v42 }
 0x115   : > { %v494_v48 = vpack.c.bf16 %v820_v46, %v817_v45 }
 0x117   : > { %831 = vmatprep.subr.bf16.mxu1 %v494_v48 }
 0x118   : > { %832 = vmatpush3.bf16.msra.mxu1 %v494_v48 }
 0x119   : > { %833 = vmatprep.subr.bf16.mxu1 %v493_v49 }
 0x11c   : > { %834 = vmatpush3.bf16.msra.mxu1 %v493_v49 }
 0x11d   : > { %851 = vmatprep.subr.msk.bf16.mxu1 %vm606_vm1, %v914_v50 }
 0x11f   : > { %836 = vmatmul.mubr.msk.bf16.vlgmr.msra.gmra.mxu1 %vm509_vm0, %v913_v51 }
 0x120   : > { %840 = vmatpush3.bf16.msra.mxu1 %v608_v52 }
 0x121   : > { %841 = vmatprep.subr.bf16.mxu1 %v915_v53 }
 0x124   : > { %842 = vmatpush3.bf16.msra.mxu1 %v915_v53 }
 0x125   : > { %843 = vmatprep.subr.bf16.mxu1 %v916_v54 }
 0x128   : > { %844 = vmatpush3.bf16.msra.mxu1 %v916_v54 }
 0x129   : > { %845 = vmatprep.subr.bf16.mxu1 %v917_v55 }
 0x12c   : > { %846 = vmatpush3.bf16.msra.mxu1 %v917_v55 }
 0x1df   : > { %v837_v60 = vpop.f32.mrf.mxu1 }
 0x1e0   : > { %v559_v5 = vadd.f32 %v837_v60, %v497_v0 }
 0x1e1   : > { %v550_v61 = vpop.f32.mrf.mxu1 }
 0x1e2   : > { %v551_v3 = vadd.f32 %v550_v61, %v495_v62  ;;  %v567_v11 = vmax.f32 %v559_v5, 0.0 }
 0x1e3   : > { %v838_v1 = vpop.f32.mrf.mxu1 }
 0x1e4   : > { %v562_v4 = vadd.f32 %v838_v1, %v498_v63  ;;  %v565_v9 = vmax.f32 %v551_v3, 0.0 }
 0x1e5   : > { %v553_v6 = vpop.f32.mrf.mxu1 }
 0x1e6   : > { %v554_v7 = vadd.f32 %v553_v6, %v496_v2  ;;  %v568_v8 = vmax.f32 %v562_v4, 0.0 }
 0x1e8   : > { %v566_v10 = vmax.f32 %v554_v7, 0.0  ;;  %v570_v13 = vpack.c.bf16 %v568_v8, %v567_v11 }
 0x1ea   : > { %v569_v12 = vpack.c.bf16 %v566_v10, %v565_v9 }
 0x1ec   : > { %847 = vmatprep.mubr.msk.bf16.mxu1 %vm599_vm2, %v569_v12 }
 0x1ed   : > { %848 = vmatmul.mubr.msk.bf16.vlgmr.msra.gmra.mxu1 %vm599_vm2, %v570_v13 }
 0x2ad   : > { %v849_v14 = vpop.f32.mrf.mxu1 }
 0x2ae   : > { %787 = vst [vmem:[%s1169_s10 + $0x30] sm:$0xff] %v849_v14 }
 0x2af   : > { %v644_v15 = vpop.f32.mrf.mxu1 }
 0x2b0   : > { %661 = vst [vmem:[%s1169_s10 + $0x10] sm:$0xff] %v644_v15 }
 0x2b1   : > { %v850_v16 = vpop.f32.mrf.mxu1 }
 0x2b2   : > { %788 = vst [vmem:[%s1169_s10 + $0x38] sm:$0xff] %v850_v16 }
 0x2b3   : > { %v647_v17 = vpop.f32.mrf.mxu1 }
 0x2b4   : > { %662 = vst [vmem:[%s1169_s10 + $0x18] sm:$0xff] %v647_v17 }
 0x2b5   : > { %931 = shalt.err (!%p928_p5)
}
 0x2b6   : > { %s932_s25 = scalar_lea.hbm %s1196_s7, 1024  ;;  %s936_s15 = scalar_lea.hbm %s1246_s5, 2048 }
 0x2b7   : > { %p933_p7 = scmp.ne.s32.totalorder %s1196_s7, %s932_s25  ;;  %p937_p12 = scmp.lt.s32.totalorder %s1196_s7, %s1246_s5 }
 0x2b8   : > { %p938_p13 = scmp.lt.s32.totalorder %s936_s15, %s932_s25 }
 0x2b9   : > { %p934_p10 = pnand %p933_p7, %p1052_p6 }
 0x2ba   : > { %p939_p0 = por %p938_p13, %p937_p12 }
 0x2bb   : > { %p935_p11 = pneg %p934_p10 }
 0x2bd   : > { %p940_p1 = pnand %p939_p0, %p935_p11 }
 0x2bf   : > { %943 = shalt.err (!%p940_p1)
}
 0x2c0   : > { %s981_s23 = smov 128   ;;  %s982_s30 = smov 256  }
 0x2c1   : > { %s983_s6 = smov 8  }
 0x2c2   : > { %854 = dma.vmem_to_hbm [thread:$0]  (%p1052_p6), %s1189_s26, 1024, %s1196_s7, %s669_s8, %s981_s23, %s982_s30, %s983_s6  }
 0x2c3 PF: > { %s696_s9 = sand.u32 1, %s966_s18   ;;  %p857_p2 = pnand %p753_p9, %p1056_p8 }
 0x2c4   : > { %s697_s22 = scalar_lea.sflag [#allocation4], %s696_s9 }
 0x2c5   : > { %p858_p3 = pneg %p857_p2 }
 0x2c7   : > { %961 = dma.done.wait (%p858_p3), %s697_s22, 1024  }
 0x2c8   : > { %963 = vsyncadd (%p858_p3), %s697_s22, 4294966272  ;;  %p15_p4 = scmp.ge.s32.totalorder %s1037_s24, 4   ;;  %s1249_s18 = smov %s970_s19 }
 0x2c9   : > { %s1250_s19 = smov %s974_s20  ;;  %s1251_s20 = smov %s1050_s27 }
 0x2ca   : > { %s1252_s21 = smov %s1037_s24  ;;  %17 = sbr.rel (!%p15_p4) target bundleno = 3 (0x3), region = 123 }
 0x2cf   :  { %702 = vsyncpa [#allocation4], 1 }
 0x2d0   :  { %704 = vsyncpa [#allocation4 + $0x1], 1 }

// kernel: tpu_custom_call.1
= control target key start
LH: loop header
LB: loop body
LE: loop exit
PB: predicated region body
PF: predicated region fallthrough
CT: control target
= control target key end

     0   :  { %10 = vsyncpa [#allocation4], 0  ;;  %s1241_s0 = inlined_call_operand.vmem [shape: f32[32,256], index: 0, kind: input, shape index: {}]   ;;  %s1242_s1 = inlined_call_operand.vmem [shape: bf16[256,50], index: 1, kind: input, shape index: {}]   ;;  %s1243_s2 = inlined_call_operand.vmem [shape: bf16[32,32], index: 2, kind: input, shape index: {}]   ;;  %s1244_s3 = inlined_call_operand.vmem [shape: f32[32,50], index: 3, kind: input, shape index: {}]   ;;  %s1245_s4 = inlined_call_operand.vmem [shape: bf16[50,256], index: 4, kind: input, shape index: {}]   ;;  %s1246_s5 = inlined_call_operand.hbm [shape: f32[2,32,256], index: 5, kind: output, shape index: {}]  }
   0x1   :  { %12 = vsyncpa [#allocation4 + $0x1], 0  ;;  %s1014_s18 = smov 0   ;;  %s1016_s19 = smov 0  }
   0x2   :  { %s1018_s20 = smov 0   ;;  %s1020_s21 = smov 0  }
   0x3 LB: > { %s750_s22 = sadd.s32 4294967295, %s978_s21   ;;  %s751_s23 = sadd.s32 4294967294, %s978_s21   ;;  %s978_s21 = sphi %s1020_s21, %s1252_s21   ;;  %s974_s20 = sphi %s1018_s20, %s1251_s20   ;;  %s970_s19 = sphi %s1016_s19, %s1250_s19   ;;  %s966_s18 = sphi %s1014_s18, %s1249_s18  }
   0x4   : > { %s1037_s24 = sadd.s32 1, %s978_s21   ;;  %s109_s25 = sadd.s32 1, %s974_s20 }
   0x5   : > { %s106_s26 = ssub.s32 %s978_s21, %s1037_s24  ;;  %p116_p0 = scmp.ne.s32.totalorder %s974_s20, %s970_s19 }
   0x6   : > { %p107_p1 = scmp.eq.s32.totalorder %s106_s26, 0  ;;  %p117_p2 = scmp.eq.s32.totalorder %s978_s21, 0 }
   0x7   : > { %p146_p3 = scmp.eq.s32.totalorder %s750_s22, 1  ;;  %p151_p4 = scmp.ne.s32.totalorder %s970_s19, %s966_s18 }
   0x8   : > { %s1050_s27 = scalar_select %p107_p1, %s974_s20, %s109_s25  }
   0x9   : > { %p118_p5 = por %p117_p2, %p116_p0  ;;  %p1052_p6 = por %p146_p3, %p116_p0 }
   0xa   : > { %p152_p7 = scmp.eq.s32.totalorder %s751_s23, 1  ;;  %p753_p9 = scmp.ge.s32.totalorder %s978_s21, 2 }
   0xc   : > { %p1056_p8 = por %p152_p7, %p151_p4  ;;  %180 = sbr.rel (%p753_p9) target bundleno = 26 (0x1a), region = 32 }
  0x11   : > { %183 = sbr.rel (!%p118_p5) target bundleno = 26 (0x1a), region = 36  ;;  %s185_s30 = sand.u32 (%p118_p5), 1, %s974_s20  }
  0x12   : > { %s754_s6 = sshll.u32 (%p118_p5), %s978_s21, 2  ;;  %s852_s7 = smul.u32 (%p118_p5), 28, %s185_s30 }
  0x13   : > { %s189_s10 = scalar_lea.vmem (%p118_p5), %s1245_s4, %s754_s6 }
  0x14   : > { %v206_v0 = vld [vmem:[%s189_s10] sm:$0xf] (%p118_p5)  ;;  %v208_v1 = vld [vmem:[%s189_s10 + $0x8] sm:$0xf] (%p118_p5)  ;;  %v210_v2 = vld [vmem:[%s189_s10 + $0x10] sm:$0xf] (%p118_p5) }
  0x15   : > { %v212_v3 = vld [vmem:[%s189_s10 + $0x18] sm:$0xf] (%p118_p5)  ;;  %v214_v4 = vld [vmem:[%s189_s10 + $0x20] sm:$0xf] (%p118_p5)  ;;  %s187_s11 = scalar_lea.vmem (%p118_p5), [#allocation2], %s852_s7 }
  0x16   : > { %207 = vst [vmem:[%s187_s11] sm:$0xf] %v206_v0  ;;  %209 = vst [vmem:[%s187_s11 + $0x4] sm:$0xf] %v208_v1  ;;  %v216_v5 = vld [vmem:[%s189_s10 + $0x28] sm:$0xf] }
  0x17   : > { %211 = vst [vmem:[%s187_s11 + $0x8] sm:$0xf] %v210_v2  ;;  %213 = vst [vmem:[%s187_s11 + $0xc] sm:$0xf] %v212_v3  ;;  %v218_v6 = vld [vmem:[%s189_s10 + $0x30] sm:$0xf] }
  0x18   : > { %215 = vst [vmem:[%s187_s11 + $0x10] sm:$0xf] %v214_v4  ;;  %217 = vst [vmem:[%s187_s11 + $0x14] sm:$0xf] %v216_v5 }
  0x19   : > { %219 = vst [vmem:[%s187_s11 + $0x18] sm:$0xf] %v218_v6 }
  0x1a PF: > { %p755_p10 = scmp.ge.s32.totalorder %s978_s21, 1  ;;  %p256_p11 = scmp.lt.s32.totalorder %s978_s21, 3 }
  0x1c   : > { %p257_p12 = pnand %p755_p10, %p256_p11 }
  0x1d   : > { %s1147_s14 = sand.u32 (!%p257_p12), 1, %s970_s19   ;;  %s1162_s25 = sshll.u32 (!%p257_p12), %s750_s22, 7 }
  0x1e   : > { %260 = sbr.rel (%p257_p12) target bundleno = 707 (0x2c3), region = 77  ;;  %s756_s26 = sshll.u32 (!%p257_p12), %s1147_s14, 6 }
  0x1f   : > { %s853_s15 = smul.u32 (!%p257_p12), 28, %s1147_s14  ;;  %s300_s30 = sshra.s32 (!%p257_p12), %s1162_s25, 7 }
  0x20   : > { %s758_s6 = sshll.u32 (!%p257_p12), %s300_s30, 3  ;;  %s1169_s10 = scalar_lea.vmem (!%p257_p12), [#allocation3], %s756_s26 }
  0x21   : > { %s1150_s16 = scalar_lea.vmem (!%p257_p12), [#allocation2], %s853_s15  ;;  %s303_s9 = scalar_lea.vmem (!%p257_p12), %s1241_s0, %s758_s6 }
  0x22   : > { %s681_s26 = sshll.u32 (!%p257_p12), %s1169_s10, 4  ;;  %s1196_s7 = scalar_lea.hbm (!%p257_p12), %s1246_s5, %s1162_s25  ;;  %s1189_s26 = int_to_ptr.vmem [resolvable:$true] %s681_s26 }
  0x23   : > { %v896_v7 = vld [vmem:[%s1242_s1 + $0x78] sm:$0xff]   ;;  %v898_v9 = vld [vmem:[%s1242_s1 + $0x70] sm:$0xff]   ;;  %v900_v11 = vld [vmem:[%s1242_s1 + $0x68] sm:$0xff]   ;;  %vm509_vm0 = vcmask 261120   ;;  %vm606_vm1 = vcmask 1040384   ;;  %vm599_vm2 = vcmask 408576  }
  0x24   : > { %v897_v8 = vld [vmem:[%s1242_s1 + $0x38] sm:$0xff]   ;;  %793 = vmatprep.subr.bf16.mxu0 %v896_v7  ;;  %v899_v10 = vld [vmem:[%s1242_s1 + $0x30] sm:$0xff]   ;;  %v901_v12 = vld [vmem:[%s1242_s1 + $0x28] sm:$0xff]   ;;  %s669_s8 = scalar_lea.sflag [#allocation4], %s1147_s14  ;;  %s980_s22 = smov [#allocation3]  }
  0x25   : > { %794 = vmatpush3.bf16.msra.mxu0 %v897_v8  ;;  %v902_v13 = vld [vmem:[%s1242_s1 + $0x60] sm:$0xff]   ;;  %v904_v15 = vld [vmem:[%s1242_s1 + $0x58] sm:$0xff]   ;;  %v906_v17 = vld [vmem:[%s1242_s1 + $0x50] sm:$0xff]   ;;  %s922_s11 = sshll.u32 %s980_s22, 4  ;;  %s923_s11 = int_to_ptr.vmem [resolvable:$false] %s922_s11 }
  0x26   : > { %795 = vmatprep.subr.bf16.mxu0 %v898_v9  ;;  %v903_v14 = vld [vmem:[%s1242_s1 + $0x20] sm:$0xff]   ;;  %v905_v16 = vld [vmem:[%s1242_s1 + $0x18] sm:$0xff]   ;;  %v293_v18 = vld [vmem:[%s1241_s0 + $0x8] sm:$0xff]  ;;  %s924_s12 = scalar_lea.vmem %s923_s11, 2048  ;;  %p925_p2 = scmp.lt.s32.totalorder %s1189_s26, %s923_s11 }
  0x27   : > { %v295_v19 = vld [vmem:[%s1241_s0 + $0x18] sm:$0xff]  ;;  %v907_v21 = vld [vmem:[%s1242_s1 + $0x10] sm:$0xff]   ;;  %v908_v22 = vld [vmem:[%s1242_s1 + $0x48] sm:$0xff]  }
  0x28   : > { %v309_v20 = vpack.c.bf16 %v295_v19, %v293_v18  ;;  %v909_v23 = vld [vmem:[%s1242_s1 + $0x8] sm:$0xff]   ;;  %v910_v24 = vld [vmem:[%s1242_s1 + $0x40] sm:$0xff]   ;;  %v294_v27 = vld [vmem:[%s1241_s0 + $0x10] sm:$0xff] }
  0x29   : > { %796 = vmatpush3.bf16.msra.mxu0 %v899_v10  ;;  %v911_v25 = vld [vmem:[%s1242_s1] sm:$0xff]   ;;  %v297_v28 = vld [vmem:[%s1241_s0 + $0x28] sm:$0xff]  ;;  %v299_v29 = vld [vmem:[%s1241_s0 + $0x38] sm:$0xff] }
  0x2a   : > { %797 = vmatprep.subr.bf16.mxu0 %v900_v11  ;;  %472 = vmatprep.mubr.bf16.mxu0 %v309_v20  ;;  %v292_v26 = vld [vmem:[%s1241_s0] sm:$0xff]  ;;  %v311_v31 = vpack.c.bf16 %v299_v29, %v297_v28  ;;  %v298_v33 = vld [vmem:[%s1241_s0 + $0x30] sm:$0xff]  ;;  %v913_v51 = vld [vmem:[%s1243_s2 + $0x8] sm:$0xff]  }
  0x2b   : > { %v308_v30 = vpack.c.bf16 %v294_v27, %v292_v26  ;;  %v296_v32 = vld [vmem:[%s1241_s0 + $0x20] sm:$0xff]  ;;  %v914_v50 = vld [vmem:[%s1150_s16 + $0x18] ss:$0 sps:$4 sm:$0x11]   ;;  %v915_v53 = vld [vmem:[%s1150_s16 + $0x10] sm:$0xff]  }
  0x2c   : > { %v310_v34 = vpack.c.bf16 %v298_v33, %v296_v32  ;;  %v912_v35 = vld [vmem:[%s1243_s2] sm:$0xff]   ;;  %v608_v52 = vsel %vm606_vm1, %v914_v50, 0  ;;  %v305_v57 = vld [vmem:[%s303_s9 + $0x10] sm:$0xff]  ;;  %v498_v63 = vld [vmem:[%s1244_s3 + $0x18] sm:$0xff] }
  0x2d   : > { %798 = vmatpush3.bf16.msra.mxu0 %v901_v12  ;;  %835 = vmatprep.mubr.msk.bf16.mxu1 %vm509_vm0, %v912_v35  ;;  %v916_v54 = vld [vmem:[%s1150_s16 + $0x8] sm:$0xff]   ;;  %v917_v55 = vld [vmem:[%s1150_s16] sm:$0xff]   ;;  %v307_v59 = vld [vmem:[%s303_s9 + $0x30] sm:$0xff]  ;;  %660 = vst [vmem:[%s1169_s10 + $0x8] sm:$0xff] %v305_v57 }
  0x2e   : > { %799 = vmatprep.subr.bf16.mxu0 %v902_v13  ;;  %v304_v56 = vld [vmem:[%s303_s9] sm:$0xff]  ;;  %786 = vst [vmem:[%s1169_s10 + $0x28] sm:$0xff] %v307_v59  ;;  %v497_v0 = vld [vmem:[%s1244_s3 + $0x10] sm:$0xff]  ;;  %v496_v2 = vld [vmem:[%s1244_s3 + $0x8] sm:$0xff] }
  0x2f   : > { %v306_v58 = vld [vmem:[%s303_s9 + $0x20] sm:$0xff]  ;;  %659 = vst [vmem:[%s1169_s10] sm:$0xff] %v304_v56  ;;  %s918_s9 = scalar_lea.vmem %s1189_s26, 1024 }
  0x30   : > { %785 = vst [vmem:[%s1169_s10 + $0x20] sm:$0xff] %v306_v58  ;;  %v495_v62 = vld [vmem:[%s1244_s3] sm:$0xff]  ;;  %p919_p13 = scmp.ne.s32.totalorder %s1189_s26, %s918_s9  ;;  %p926_p3 = scmp.lt.s32.totalorder %s924_s12, %s918_s9 }
  0x31   : > { %800 = vmatpush3.bf16.msra.mxu0 %v903_v14 }
  0x32   : > { %801 = vmatprep.subr.bf16.mxu0 %v904_v15  ;;  %p920_p0 = pnand %p919_p13, %p1052_p6  ;;  %p927_p4 = por %p926_p3, %p925_p2 }
  0x34   : > { %p921_p1 = pneg %p920_p0 }
  0x35   : > { %802 = vmatpush3.bf16.msra.mxu0 %v905_v16 }
  0x36   : > { %803 = vmatprep.subr.bf16.mxu0 %v906_v17  ;;  %p928_p5 = pnand %p927_p4, %p921_p1 }
  0x39   : > { %804 = vmatpush3.bf16.msra.mxu0 %v907_v21 }
  0x3a   : > { %805 = vmatprep.subr.bf16.mxu0 %v908_v22 }
  0x3d   : > { %806 = vmatpush3.bf16.msra.mxu0 %v909_v23 }
  0x3e   : > { %807 = vmatprep.subr.bf16.mxu0 %v910_v24 }
  0x41   : > { %808 = vmatpush3.bf16.msra.mxu0 %v911_v25 }
  0x44   : > { %473 = vmatmul.mubr.bf16.vlgmr.msra.gmra.mxu0 %v308_v30 }
  0x45   : > { %480 = vmatprep.mubr.bf16.mxu0 %v311_v31 }
  0x4c   : > { %481 = vmatmul.mubr.bf16.gmra.mxu0 %v310_v34 }
 0x104   : > { %v809_v36 = vpop.f32.mrf.mxu0 }
 0x106   : > { %v810_v37 = vpop.f32.mrf.mxu0 }
 0x107   : > { %v811_v47 = vadd.f32 %v810_v37, %v809_v36 }
 0x108   : > { %v812_v38 = vpop.f32.mrf.mxu0 }
 0x10a   : > { %v813_v39 = vpop.f32.mrf.mxu0 }
 0x10b   : > { %v814_v44 = vadd.f32 %v813_v39, %v812_v38 }
 0x10c   : > { %v815_v40 = vpop.f32.mrf.mxu0 }
 0x10d   : > { %v493_v49 = vpack.c.bf16 %v814_v44, %v811_v47 }
 0x10e   : > { %v816_v41 = vpop.f32.mrf.mxu0 }
 0x10f   : > { %v817_v45 = vadd.f32 %v816_v41, %v815_v40 }
 0x110   : > { %v818_v42 = vpop.f32.mrf.mxu0 }
 0x112   : > { %v819_v43 = vpop.f32.mrf.mxu0 }
 0x113   : > { %v820_v46 = vadd.f32 %v819_v43, %v818_v42 }
 0x115   : > { %v494_v48 = vpack.c.bf16 %v820_v46, %v817_v45 }
 0x117   : > { %831 = vmatprep.subr.bf16.mxu1 %v494_v48 }
 0x118   : > { %832 = vmatpush3.bf16.msra.mxu1 %v494_v48 }
 0x119   : > { %833 = vmatprep.subr.bf16.mxu1 %v493_v49 }
 0x11c   : > { %834 = vmatpush3.bf16.msra.mxu1 %v493_v49 }
 0x11d   : > { %851 = vmatprep.subr.msk.bf16.mxu1 %vm606_vm1, %v914_v50 }
 0x11f   : > { %836 = vmatmul.mubr.msk.bf16.vlgmr.msra.gmra.mxu1 %vm509_vm0, %v913_v51 }
 0x120   : > { %840 = vmatpush3.bf16.msra.mxu1 %v608_v52 }
 0x121   : > { %841 = vmatprep.subr.bf16.mxu1 %v915_v53 }
 0x124   : > { %842 = vmatpush3.bf16.msra.mxu1 %v915_v53 }
 0x125   : > { %843 = vmatprep.subr.bf16.mxu1 %v916_v54 }
 0x128   : > { %844 = vmatpush3.bf16.msra.mxu1 %v916_v54 }
 0x129   : > { %845 = vmatprep.subr.bf16.mxu1 %v917_v55 }
 0x12c   : > { %846 = vmatpush3.bf16.msra.mxu1 %v917_v55 }
 0x1df   : > { %v837_v60 = vpop.f32.mrf.mxu1 }
 0x1e0   : > { %v559_v5 = vadd.f32 %v837_v60, %v497_v0 }
 0x1e1   : > { %v550_v61 = vpop.f32.mrf.mxu1 }
 0x1e2   : > { %v551_v3 = vadd.f32 %v550_v61, %v495_v62  ;;  %v567_v11 = vmax.f32 %v559_v5, 0.0 }
 0x1e3   : > { %v838_v1 = vpop.f32.mrf.mxu1 }
 0x1e4   : > { %v562_v4 = vadd.f32 %v838_v1, %v498_v63  ;;  %v565_v9 = vmax.f32 %v551_v3, 0.0 }
 0x1e5   : > { %v553_v6 = vpop.f32.mrf.mxu1 }
 0x1e6   : > { %v554_v7 = vadd.f32 %v553_v6, %v496_v2  ;;  %v568_v8 = vmax.f32 %v562_v4, 0.0 }
 0x1e8   : > { %v566_v10 = vmax.f32 %v554_v7, 0.0  ;;  %v570_v13 = vpack.c.bf16 %v568_v8, %v567_v11 }
 0x1ea   : > { %v569_v12 = vpack.c.bf16 %v566_v10, %v565_v9 }
 0x1ec   : > { %847 = vmatprep.mubr.msk.bf16.mxu1 %vm599_vm2, %v569_v12 }
 0x1ed   : > { %848 = vmatmul.mubr.msk.bf16.vlgmr.msra.gmra.mxu1 %vm599_vm2, %v570_v13 }
 0x2ad   : > { %v849_v14 = vpop.f32.mrf.mxu1 }
 0x2ae   : > { %787 = vst [vmem:[%s1169_s10 + $0x30] sm:$0xff] %v849_v14 }
 0x2af   : > { %v644_v15 = vpop.f32.mrf.mxu1 }
 0x2b0   : > { %661 = vst [vmem:[%s1169_s10 + $0x10] sm:$0xff] %v644_v15 }
 0x2b1   : > { %v850_v16 = vpop.f32.mrf.mxu1 }
 0x2b2   : > { %788 = vst [vmem:[%s1169_s10 + $0x38] sm:$0xff] %v850_v16 }
 0x2b3   : > { %v647_v17 = vpop.f32.mrf.mxu1 }
 0x2b4   : > { %662 = vst [vmem:[%s1169_s10 + $0x18] sm:$0xff] %v647_v17 }
 0x2b5   : > { %931 = shalt.err (!%p928_p5)
}
 0x2b6   : > { %s932_s25 = scalar_lea.hbm %s1196_s7, 1024  ;;  %s936_s15 = scalar_lea.hbm %s1246_s5, 2048 }
 0x2b7   : > { %p933_p7 = scmp.ne.s32.totalorder %s1196_s7, %s932_s25  ;;  %p937_p12 = scmp.lt.s32.totalorder %s1196_s7, %s1246_s5 }
 0x2b8   : > { %p938_p13 = scmp.lt.s32.totalorder %s936_s15, %s932_s25 }
 0x2b9   : > { %p934_p10 = pnand %p933_p7, %p1052_p6 }
 0x2ba   : > { %p939_p0 = por %p938_p13, %p937_p12 }
 0x2bb   : > { %p935_p11 = pneg %p934_p10 }
 0x2bd   : > { %p940_p1 = pnand %p939_p0, %p935_p11 }
 0x2bf   : > { %943 = shalt.err (!%p940_p1)
}
 0x2c0   : > { %s981_s23 = smov 128   ;;  %s982_s30 = smov 256  }
 0x2c1   : > { %s983_s6 = smov 8  }
 0x2c2   : > { %854 = dma.vmem_to_hbm [thread:$0]  (%p1052_p6), %s1189_s26, 1024, %s1196_s7, %s669_s8, %s981_s23, %s982_s30, %s983_s6  }
 0x2c3 PF: > { %s696_s9 = sand.u32 1, %s966_s18   ;;  %p857_p2 = pnand %p753_p9, %p1056_p8 }
 0x2c4   : > { %s697_s22 = scalar_lea.sflag [#allocation4], %s696_s9 }
 0x2c5   : > { %p858_p3 = pneg %p857_p2 }
 0x2c7   : > { %961 = dma.done.wait (%p858_p3), %s697_s22, 1024  }
 0x2c8   : > { %963 = vsyncadd (%p858_p3), %s697_s22, 4294966272  ;;  %p15_p4 = scmp.ge.s32.totalorder %s1037_s24, 4   ;;  %s1249_s18 = smov %s970_s19 }
 0x2c9   : > { %s1250_s19 = smov %s974_s20  ;;  %s1251_s20 = smov %s1050_s27 }
 0x2ca   : > { %s1252_s21 = smov %s1037_s24  ;;  %17 = sbr.rel (!%p15_p4) target bundleno = 3 (0x3), region = 123 }
 0x2cf   :  { %702 = vsyncpa [#allocation4], 1 }
 0x2d0   :  { %704 = vsyncpa [#allocation4 + $0x1], 1 }

</bundles_post_ra>
